<compile_context>
chip_gen: v7x
topology: tpu7x:2x2x1
jax: 0.10.0
libtpu: 0.0.40
codegen_flags: <defaults>
</compile_context>

<pallas_src>
import functools

import jax
import jax.numpy as jnp
from jax import lax
from jax.experimental import pallas as pl
from jax.experimental.pallas import tpu as pltpu


# ----------------------------- helpers ---------------------------------------


def _round_up(x, m):
    return ((x + m - 1) // m) * m


def _divisors_desc(n):
    return [d for d in range(n, 0, -1) if n % d == 0]


def _vmem_capacity_bytes():
    try:
        info = pltpu.get_tpu_info()
        cap = int(getattr(info, "vmem_capacity_bytes", 0) or 0)
        if cap > 0:
            return cap
    except Exception:
        pass
    return 64 << 20          # conservative (v7x-sized) fallback


def _vmem_target_bytes(cap):
    # per-step footprint target (input/weight/output double-buffered + scratch)
    return max(8 << 20, min(int(0.35 * cap), 44 << 20))


def _vmem_limit_bytes(cap, footprint):
    return int(min(0.75 * cap, max(32 << 20, 1.35 * footprint + (2 << 20))))


# ----------------------------- conv kernels ----------------------------------


def _make_conv_slab_kernel(Wp, cin, n_cout_tiles):
    """Fused-K im2col conv: one (ct, 9*Cin) x (9*Cin, Nslab) MXU contraction."""

    def kernel(xp_ref, w_ref, b_ref, o_ref, slab_ref):
        # xp_ref : (1, 4, Cin, Lpad)  flattened, stacked parity planes (batch tile)
        # w_ref  : (ct, 9*Cin)
        # b_ref  : (ct, 1) float32
        # o_ref  : (1, ct, Nslab)
        # slab   : (9*Cin, Nslab)     im2col staging, built once per batch tile
        nslab = slab_ref.shape[1]

        def build_slab():
            for dy in range(3):
                qy, ry = divmod(dy, 2)
                for dx in range(3):
                    qx, rx = divmod(dx, 2)
                    t = dy * 3 + dx
                    off = qy * Wp + qx
                    # TODO(synk): off>0 slices are lane-misaligned loads; could be
                    # routed through pltpu.roll (XLU) for a small extra win.
                    slab_ref[t * cin:(t + 1) * cin, :] = (
                        xp_ref[0, 2 * ry + rx, :, off:off + nslab])

        if n_cout_tiles == 1:
            build_slab()
        else:
            # slab depends only on the batch tile -> build at the first Cout tile,
            # reuse for the rest (Cout grid axis is "arbitrary").
            pl.when(pl.program_id(1) == 0)(build_slab)

        acc = jnp.dot(w_ref[...], slab_ref[...],
                      preferred_element_type=jnp.float32)        # (ct, Nslab)
        acc = acc + b_ref[...]
        o_ref[0] = acc.astype(o_ref.dtype)

    return kernel


def _make_conv_taps_kernel(Wp, cin):
    """Large-Cin path: 9 accumulated per-tap matmuls, no im2col staging copies."""

    def kernel(xp_ref, w_ref, b_ref, o_ref, acc_ref):
        # xp_ref : (1, 4, Cin, Lpad);  w_ref: (9, ct, Cin);  b_ref: (ct, 1) f32
        # o_ref  : (1, ct, Nslab);     acc_ref: (ct, Nslab) f32
        nslab = o_ref.shape[2]
        for dy in range(3):
            qy, ry = divmod(dy, 2)
            for dx in range(3):
                qx, rx = divmod(dx, 2)
                t = dy * 3 + dx
                off = qy * Wp + qx
                win = xp_ref[0, 2 * ry + rx, :, off:off + nslab]   # (Cin, Nslab)
                part = jnp.dot(w_ref[t], win,
                               preferred_element_type=jnp.float32)
                if t == 0:
                    acc_ref[...] = part
                else:
                    acc_ref[...] += part
        o_ref[0] = (acc_ref[...] + b_ref[...]).astype(o_ref.dtype)

    return kernel


def _conv_footprint(C, ct, bt, Hq, Wp, isz, use_taps):
    lflat = bt * Hq * Wp
    nslab = _round_up(lflat, 128)
    lpad = _round_up(nslab + Wp + 1, 128)
    fp = 2 * (4 * C * lpad) * isz          # input block (double buffered)
    fp += 2 * (ct * 9 * C) * isz           # weight block
    fp += 2 * (ct * nslab) * isz           # output block
    fp += (ct * nslab) * 4 if use_taps else (9 * C * nslab) * isz  # scratch
    return fp, nslab, lpad


def _downsample_conv(x, weight, bias):
    B, C, H, W = x.shape
    isz = jnp.dtype(x.dtype).itemsize
    Ho, Wo = (H + 1) // 2, (W + 1) // 2
    Hq, Wp = Ho + 1, Wo + 1

    vmem_cap = _vmem_capacity_bytes()
    target = _vmem_target_bytes(vmem_cap)

    if C % 256 == 0:
        ct = 256                       # fill the 256x256 MXU M axis (v6e/v7x)
    elif C % 128 == 0:
        ct = 128
    else:
        ct = C
    n_j = C // ct
    use_taps = C >= 256                # Cin alone fills MXU K -> skip the slab

    bt = 1
    for cand in _divisors_desc(B):
        if B >= 2 and B // cand < 2:   # keep >=2 parallel batch steps (megacore)
            continue
        fp_c, _, _ = _conv_footprint(C, ct, cand, Hq, Wp, isz, use_taps)
        if fp_c <= target:
            bt = cand
            break
    fp, nslab, lpad = _conv_footprint(C, ct, bt, Hq, Wp, isz, use_taps)
    vmem_limit = _vmem_limit_bytes(vmem_cap, fp)

    G = B // bt
    lflat = bt * Hq * Wp

    # --- single fused pad + parity split + vertical image stacking pass ------
    zero = jnp.zeros((), x.dtype)
    xpad = lax.pad(x, zero,
                   ((0, 0, 0), (0, 0, 0),
                    (1, 2 * Hq - H - 1, 0), (1, 2 * Wp - W - 1, 0)))
    xp = xpad.reshape(G, bt, C, Hq, 2, Wp, 2)
    xp = jnp.transpose(xp, (0, 4, 6, 2, 1, 3, 5))   # (G, ry, rx, C, bt, Hq, Wp)
    xp = xp.reshape(G, 4, C, lflat)
    xp = lax.pad(xp, zero,
                 ((0, 0, 0), (0, 0, 0), (0, 0, 0), (0, lpad - lflat, 0)))

    bias_col = bias.astype(jnp.float32).reshape(C, 1)

    if use_taps:
        # (9, Cout, Cin) with t = dy*3 + dx
        w_k = jnp.transpose(weight, (2, 3, 0, 1)).reshape(9, C, C).astype(x.dtype)
        kernel = _make_conv_taps_kernel(Wp, C)
        w_spec = pl.BlockSpec((9, ct, C), lambda b, j: (0, j, 0))
        scratch = [pltpu.VMEM((ct, nslab), jnp.float32)]
        dims = ("parallel", "parallel")
    else:
        # (Cout, 9*Cin) with K index = (dy*3 + dx)*Cin + cin (matches the slab)
        w_k = jnp.transpose(weight, (0, 2, 3, 1)).reshape(C, 9 * C).astype(x.dtype)
        kernel = _make_conv_slab_kernel(Wp, C, n_j)
        w_spec = pl.BlockSpec((ct, 9 * C), lambda b, j: (j, 0))
        scratch = [pltpu.VMEM((9 * C, nslab), x.dtype)]
        dims = ("parallel", "arbitrary")   # slab reused across Cout tiles

    grid_spec = pltpu.PrefetchScalarGridSpec(
        num_scalar_prefetch=0,
        grid=(G, n_j),
        in_specs=[
            pl.BlockSpec((1, 4, C, lpad), lambda b, j: (b, 0, 0, 0)),
            w_spec,
            pl.BlockSpec((ct, 1), lambda b, j: (j, 0)),
        ],
        out_specs=pl.BlockSpec((1, ct, nslab), lambda b, j: (b, j, 0)),
        scratch_shapes=scratch,
    )
    y_flat = pl.pallas_call(
        kernel,
        out_shape=jax.ShapeDtypeStruct((G, C, nslab), x.dtype),
        grid_spec=grid_spec,
        compiler_params=pltpu.CompilerParams(
            dimension_semantics=dims,
            vmem_limit_bytes=vmem_limit),
    )(xp, w_k, bias_col)

    # strip flat-layout garbage rows/columns (cheap output-sized pass)
    y = y_flat[:, :, :lflat].reshape(G, C, bt, Hq, Wp)
    y = jnp.transpose(y, (0, 2, 1, 3, 4)).reshape(B, C, Hq, Wp)
    return y[:, :, :Ho, :Wo]


# ----------------------------- avg-pool kernel --------------------------------


def _pool_kernel(x_ref, sel_ref, o_ref):
    """2x2 / stride-2 average pool on raw NCHW blocks (no wrapper preprocessing).

    Rows paired via sublane-strided loads; columns paired via a tiny
    0.25-selection matmul (keeps the lane axis untouched, MXU is idle anyway).
    """
    h2 = o_ref.shape[2]
    v0 = x_ref[:, :, pl.ds(0, h2, 2), :]
    v1 = x_ref[:, :, pl.ds(1, h2, 2), :]
    s = v0 + v1                                           # (bt, cb, H2, W)
    o_ref[...] = jnp.einsum(
        'bchw,wv->bchv', s, sel_ref[...],
        preferred_element_type=jnp.float32).astype(o_ref.dtype)


def _downsample_pool(x):
    # TODO(synk): the spec's `nn.AvgPool2d(stride=2)` is ill-formed in PyTorch
    # (kernel_size missing); implemented as the standard diffusion Downsample
    # average pool with kernel_size=2, stride=2 (floor for odd H/W).
    B, C, H, W = x.shape
    isz = jnp.dtype(x.dtype).itemsize
    H2, W2 = H // 2, W // 2

    vmem_cap = _vmem_capacity_bytes()
    target = _vmem_target_bytes(vmem_cap)

    bt, cb = 1, 1
    done = False
    for cb_c in _divisors_desc(C):
        for bt_c in _divisors_desc(B):
            if B >= 2 and B // bt_c < 2:   # keep >=2 parallel steps (megacore)
                continue
            fp_c = 2 * bt_c * cb_c * (H * W + H2 * W2) * isz
            if fp_c <= target:
                bt, cb = bt_c, cb_c
                done = True
                break
        if done:
            break

    fp = 2 * bt * cb * (H * W + H2 * W2) * isz
    vmem_limit = _vmem_limit_bytes(vmem_cap, fp)

    # (W, W2) column-pair selection matrix with the 1/4 folded in.
    sel = jnp.where(jnp.arange(W)[:, None] // 2 == jnp.arange(W2)[None, :],
                    0.25, 0.0).astype(x.dtype)

    grid_spec = pltpu.PrefetchScalarGridSpec(
        num_scalar_prefetch=0,
        grid=(B // bt, C // cb),
        in_specs=[
            pl.BlockSpec((bt, cb, H, W), lambda b, c: (b, c, 0, 0)),
            pl.BlockSpec((W, W2), lambda b, c: (0, 0)),
        ],
        out_specs=pl.BlockSpec((bt, cb, H2, W2), lambda b, c: (b, c, 0, 0)),
    )
    return pl.pallas_call(
        _pool_kernel,
        out_shape=jax.ShapeDtypeStruct((B, C, H2, W2), x.dtype),
        grid_spec=grid_spec,
        compiler_params=pltpu.CompilerParams(
            dimension_semantics=("parallel", "parallel"),
            vmem_limit_bytes=vmem_limit),
    )(x, sel)


# ----------------------------- public wrapper ---------------------------------


@functools.partial(jax.jit, static_argnames=("use_conv",))
def downsample_forward(x, weight, bias, use_conv):
    """x: (B, C, H, W) NCHW.  weight: (C, C, 3, 3) OIHW.  bias: (C,)."""
    if use_conv:
        return _downsample_conv(x, weight, bias)
    return _downsample_pool(x)


# ----------------------------- reference & main --------------------------------


def _reference(x, weight, bias, use_conv):
    if use_conv:
        y = lax.conv_general_dilated(
            x, weight, window_strides=(2, 2), padding=((1, 1), (1, 1)),
            dimension_numbers=("NCHW", "OIHW", "NCHW"))
        return y + bias[None, :, None, None]
    B, C, H, W = x.shape
    H2, W2 = H // 2, W // 2
    xc = x[:, :, :2 * H2, :2 * W2]
    return xc.reshape(B, C, H2, 2, W2, 2).mean(axis=(3, 5))


if __name__ == "__main__":
    B, C, H, W = 2, 4, 16, 16
    key = jax.random.PRNGKey(0)
    kx, kw, kb = jax.random.split(key, 3)

    x = jax.random.normal(kx, (B, C, H, W), dtype=jnp.float32)

    # Deterministic Conv2d(C, C, 3, stride=2, padding=1) init (PyTorch-style).
    fan_in = C * 3 * 3
    bound = 1.0 / (fan_in ** 0.5)
    weight = jax.random.uniform(kw, (C, C, 3, 3), jnp.float32, -bound, bound)
    bias = jax.random.uniform(kb, (C,), jnp.float32, -bound, bound)

    # use_conv = True path: Conv2d(C, C, 3, stride=2, padding=1)
    y_conv = jax.block_until_ready(
        downsample_forward(x, weight, bias, use_conv=True))
    y_conv_ref = _reference(x, weight, bias, True)
    assert y_conv.shape == (B, C, H // 2, W // 2), y_conv.shape
    err_c = float(jnp.max(jnp.abs(y_conv - y_conv_ref)))
    assert err_c < 2e-2, f"conv max abs err {err_c}"

    # use_conv = False path: AvgPool2d(kernel_size=2, stride=2)
    y_pool = jax.block_until_ready(
        downsample_forward(x, weight, bias, use_conv=False))
    y_pool_ref = _reference(x, weight, bias, False)
    assert y_pool.shape == (B, C, H // 2, W // 2), y_pool.shape
    err_p = float(jnp.max(jnp.abs(y_pool - y_pool_ref)))
    assert err_p < 2e-2, f"pool max abs err {err_p}"

    print("KERNEL_OK")
</pallas_src>

<mosaic_0001>
module attributes {stable_mosaic.version = 11 : i64} {
  func.func @kernel(%arg0: i32, %arg1: i32, %arg2: memref<1x4x4x256xf32, #tpu.memory_space<vmem>>, %arg3: memref<4x36xf32, #tpu.memory_space<vmem>>, %arg4: memref<4x1xf32, #tpu.memory_space<vmem>>, %arg5: memref<1x4x128xf32, #tpu.memory_space<vmem>>, %arg6: memref<36x128xf32, #tpu.memory_space<vmem>>) attributes {dimension_semantics = [#tpu.dimension_semantics<parallel>, #tpu.dimension_semantics<arbitrary>], iteration_bounds = array<i64: 2, 1>, scalar_prefetch = 0 : i64, scratch_operands = 1 : i64, tpu.core_type = #tpu.core_type<tc>, window_params = [{transform_indices = @transform_0, window_bounds = array<i64: 1, 4, 4, 256>}, {transform_indices = @transform_1, window_bounds = array<i64: 4, 36>}, {transform_indices = @transform_2, window_bounds = array<i64: 4, 1>}, {transform_indices = @transform_3, window_bounds = array<i64: 1, 4, 128>}]} {
    %c0 = arith.constant 0 : index
    %c0_0 = arith.constant 0 : index
    %c0_1 = arith.constant 0 : index
    %c0_2 = arith.constant 0 : index
    %0 = vector.load %arg2[%c0, %c0_0, %c0_1, %c0_2] : memref<1x4x4x256xf32, #tpu.memory_space<vmem>>, vector<1x1x4x128xf32>
    %1 = vector.shape_cast %0 : vector<1x1x4x128xf32> to vector<4x128xf32>
    %c0_3 = arith.constant 0 : index
    %c0_4 = arith.constant 0 : index
    %2 = vector.load %arg6[%c0_3, %c0_4] : memref<36x128xf32, #tpu.memory_space<vmem>>, vector<4x128xf32>
    tpu.vector_store %arg6[%c0_3, %c0_4], %1 {strides = array<i32>} : memref<36x128xf32, #tpu.memory_space<vmem>>, vector<4x128xf32>,
    %c0_5 = arith.constant 0 : index
    %c1 = arith.constant 1 : index
    %c0_6 = arith.constant 0 : index
    %c0_7 = arith.constant 0 : index
    %3 = vector.load %arg2[%c0_5, %c1, %c0_6, %c0_7] : memref<1x4x4x256xf32, #tpu.memory_space<vmem>>, vector<1x1x4x128xf32>
    %4 = vector.shape_cast %3 : vector<1x1x4x128xf32> to vector<4x128xf32>
    %c4 = arith.constant 4 : index
    %c0_8 = arith.constant 0 : index
    %5 = vector.load %arg6[%c4, %c0_8] : memref<36x128xf32, #tpu.memory_space<vmem>>, vector<4x128xf32>
    tpu.vector_store %arg6[%c4, %c0_8], %4 {strides = array<i32>} : memref<36x128xf32, #tpu.memory_space<vmem>>, vector<4x128xf32>,
    %c0_9 = arith.constant 0 : index
    %c0_10 = arith.constant 0 : index
    %c0_11 = arith.constant 0 : index
    %c1_12 = arith.constant 1 : index
    %6 = vector.load %arg2[%c0_9, %c0_10, %c0_11, %c1_12] : memref<1x4x4x256xf32, #tpu.memory_space<vmem>>, vector<1x1x4x128xf32>
    %7 = vector.shape_cast %6 : vector<1x1x4x128xf32> to vector<4x128xf32>
    %c8 = arith.constant 8 : index
    %c0_13 = arith.constant 0 : index
    %8 = vector.load %arg6[%c8, %c0_13] : memref<36x128xf32, #tpu.memory_space<vmem>>, vector<4x128xf32>
    tpu.vector_store %arg6[%c8, %c0_13], %7 {strides = array<i32>} : memref<36x128xf32, #tpu.memory_space<vmem>>, vector<4x128xf32>,
    %c0_14 = arith.constant 0 : index
    %c2 = arith.constant 2 : index
    %c0_15 = arith.constant 0 : index
    %c0_16 = arith.constant 0 : index
    %9 = vector.load %arg2[%c0_14, %c2, %c0_15, %c0_16] : memref<1x4x4x256xf32, #tpu.memory_space<vmem>>, vector<1x1x4x128xf32>
    %10 = vector.shape_cast %9 : vector<1x1x4x128xf32> to vector<4x128xf32>
    %c12 = arith.constant 12 : index
    %c0_17 = arith.constant 0 : index
    %11 = vector.load %arg6[%c12, %c0_17] : memref<36x128xf32, #tpu.memory_space<vmem>>, vector<4x128xf32>
    tpu.vector_store %arg6[%c12, %c0_17], %10 {strides = array<i32>} : memref<36x128xf32, #tpu.memory_space<vmem>>, vector<4x128xf32>,
    %c0_18 = arith.constant 0 : index
    %c3 = arith.constant 3 : index
    %c0_19 = arith.constant 0 : index
    %c0_20 = arith.constant 0 : index
    %12 = vector.load %arg2[%c0_18, %c3, %c0_19, %c0_20] : memref<1x4x4x256xf32, #tpu.memory_space<vmem>>, vector<1x1x4x128xf32>
    %13 = vector.shape_cast %12 : vector<1x1x4x128xf32> to vector<4x128xf32>
    %c16 = arith.constant 16 : index
    %c0_21 = arith.constant 0 : index
    %14 = vector.load %arg6[%c16, %c0_21] : memref<36x128xf32, #tpu.memory_space<vmem>>, vector<4x128xf32>
    tpu.vector_store %arg6[%c16, %c0_21], %13 {strides = array<i32>} : memref<36x128xf32, #tpu.memory_space<vmem>>, vector<4x128xf32>,
    %c0_22 = arith.constant 0 : index
    %c2_23 = arith.constant 2 : index
    %c0_24 = arith.constant 0 : index
    %c1_25 = arith.constant 1 : index
    %15 = vector.load %arg2[%c0_22, %c2_23, %c0_24, %c1_25] : memref<1x4x4x256xf32, #tpu.memory_space<vmem>>, vector<1x1x4x128xf32>
    %16 = vector.shape_cast %15 : vector<1x1x4x128xf32> to vector<4x128xf32>
    %c20 = arith.constant 20 : index
    %c0_26 = arith.constant 0 : index
    %17 = vector.load %arg6[%c20, %c0_26] : memref<36x128xf32, #tpu.memory_space<vmem>>, vector<4x128xf32>
    tpu.vector_store %arg6[%c20, %c0_26], %16 {strides = array<i32>} : memref<36x128xf32, #tpu.memory_space<vmem>>, vector<4x128xf32>,
    %c0_27 = arith.constant 0 : index
    %c0_28 = arith.constant 0 : index
    %c0_29 = arith.constant 0 : index
    %c9 = arith.constant 9 : index
    %18 = vector.load %arg2[%c0_27, %c0_28, %c0_29, %c9] : memref<1x4x4x256xf32, #tpu.memory_space<vmem>>, vector<1x1x4x128xf32>
    %19 = vector.shape_cast %18 : vector<1x1x4x128xf32> to vector<4x128xf32>
    %c24 = arith.constant 24 : index
    %c0_30 = arith.constant 0 : index
    %20 = vector.load %arg6[%c24, %c0_30] : memref<36x128xf32, #tpu.memory_space<vmem>>, vector<4x128xf32>
    tpu.vector_store %arg6[%c24, %c0_30], %19 {strides = array<i32>} : memref<36x128xf32, #tpu.memory_space<vmem>>, vector<4x128xf32>,
    %c0_31 = arith.constant 0 : index
    %c1_32 = arith.constant 1 : index
    %c0_33 = arith.constant 0 : index
    %c9_34 = arith.constant 9 : index
    %21 = vector.load %arg2[%c0_31, %c1_32, %c0_33, %c9_34] : memref<1x4x4x256xf32, #tpu.memory_space<vmem>>, vector<1x1x4x128xf32>
    %22 = vector.shape_cast %21 : vector<1x1x4x128xf32> to vector<4x128xf32>
    %c28 = arith.constant 28 : index
    %c0_35 = arith.constant 0 : index
    %23 = vector.load %arg6[%c28, %c0_35] : memref<36x128xf32, #tpu.memory_space<vmem>>, vector<4x128xf32>
    tpu.vector_store %arg6[%c28, %c0_35], %22 {strides = array<i32>} : memref<36x128xf32, #tpu.memory_space<vmem>>, vector<4x128xf32>,
    %c0_36 = arith.constant 0 : index
    %c0_37 = arith.constant 0 : index
    %c0_38 = arith.constant 0 : index
    %c10 = arith.constant 10 : index
    %24 = vector.load %arg2[%c0_36, %c0_37, %c0_38, %c10] : memref<1x4x4x256xf32, #tpu.memory_space<vmem>>, vector<1x1x4x128xf32>
    %25 = vector.shape_cast %24 : vector<1x1x4x128xf32> to vector<4x128xf32>
    %c32 = arith.constant 32 : index
    %c0_39 = arith.constant 0 : index
    %26 = vector.load %arg6[%c32, %c0_39] : memref<36x128xf32, #tpu.memory_space<vmem>>, vector<4x128xf32>
    tpu.vector_store %arg6[%c32, %c0_39], %25 {strides = array<i32>} : memref<36x128xf32, #tpu.memory_space<vmem>>, vector<4x128xf32>,
    %c0_40 = arith.constant 0 : index
    %c0_41 = arith.constant 0 : index
    %27 = vector.load %arg3[%c0_40, %c0_41] : memref<4x36xf32, #tpu.memory_space<vmem>>, vector<4x36xf32>
    %c0_42 = arith.constant 0 : index
    %c0_43 = arith.constant 0 : index
    %28 = vector.load %arg6[%c0_42, %c0_43] : memref<36x128xf32, #tpu.memory_space<vmem>>, vector<36x128xf32>
    %cst = arith.constant dense<0.000000e+00> : vector<4x128xf32>
    %29 = tpu.matmul %27, %28, %cst {dimension_numbers = #tpu.dot_dimension_numbers<[1], [0], [0], [1], [0, 0, 1, 1], [], []>} : vector<4x36xf32>, vector<36x128xf32>, vector<4x128xf32> -> vector<4x128xf32>
    %c0_44 = arith.constant 0 : index
    %c0_45 = arith.constant 0 : index
    %30 = vector.load %arg4[%c0_44, %c0_45] : memref<4x1xf32, #tpu.memory_space<vmem>>, vector<4x1xf32>
    %31 = vector.broadcast %30 : vector<4x1xf32> to vector<4x128xf32>
    %32 = arith.addf %29, %31 : vector<4x128xf32>
    %c0_46 = arith.constant 0 : index
    %c0_47 = arith.constant 0 : index
    %c0_48 = arith.constant 0 : index
    %33 = vector.load %arg5[%c0_46, %c0_47, %c0_48] : memref<1x4x128xf32, #tpu.memory_space<vmem>>, vector<1x4x128xf32>
    %34 = vector.shape_cast %33 : vector<1x4x128xf32> to vector<4x128xf32>
    %35 = vector.shape_cast %32 : vector<4x128xf32> to vector<1x4x128xf32>
    tpu.vector_store %arg5[%c0_46, %c0_47, %c0_48], %35 {strides = array<i32>} : memref<1x4x128xf32, #tpu.memory_space<vmem>>, vector<1x4x128xf32>,
    return
  }
  func.func @transform_0(%arg0: i32, %arg1: i32) -> (i32, i32, i32, i32) {
    %c0_i32 = arith.constant 0 : i32
    %c0_i32_0 = arith.constant 0 : i32
    %c0_i32_1 = arith.constant 0 : i32
    %c0_i32_2 = arith.constant 0 : i32
    return %arg0, %c0_i32, %c0_i32_0, %c0_i32_1 : i32, i32, i32, i32
  }
  func.func @transform_1(%arg0: i32, %arg1: i32) -> (i32, i32) {
    %c0_i32 = arith.constant 0 : i32
    %c0_i32_0 = arith.constant 0 : i32
    return %arg1, %c0_i32 : i32, i32
  }
  func.func @transform_2(%arg0: i32, %arg1: i32) -> (i32, i32) {
    %c0_i32 = arith.constant 0 : i32
    %c0_i32_0 = arith.constant 0 : i32
    return %arg1, %c0_i32 : i32, i32
  }
  func.func @transform_3(%arg0: i32, %arg1: i32) -> (i32, i32, i32) {
    %c0_i32 = arith.constant 0 : i32
    %c0_i32_0 = arith.constant 0 : i32
    return %arg0, %arg1, %c0_i32 : i32, i32, i32
  }
}

</mosaic_0001>

<bundles_post_ra>
// kernel: downsample_forward.1
= control target key start
LH: loop header
LB: loop body
LE: loop exit
PB: predicated region body
PF: predicated region fallthrough
CT: control target
= control target key end

     0   :  { %s611_s12 = smov 0   ;;  %s613_s13 = smov 0   ;;  %s654_s0 = inlined_call_operand.vmem [shape: f32[2,4,4,256], index: 0, kind: input, shape index: {}]   ;;  %s655_s1 = inlined_call_operand.vmem [shape: f32[4,36], index: 1, kind: input, shape index: {}]   ;;  %s656_s2 = inlined_call_operand.vmem [shape: f32[4,1], index: 2, kind: input, shape index: {}]   ;;  %s657_s3 = inlined_call_operand.vmem [shape: f32[2,4,128], index: 3, kind: output, shape index: {}]  }
   0x1   :  { %s615_s14 = smov 0  }
   0x2 LB: > { %s25_s15 = sadd.s32 1, %s578_s13  ;;  %p486_p0 = scmp.ge.s32.totalorder %s582_s14, 1  ;;  %s582_s14 = sphi %s615_s14, %s13_s14   ;;  %s578_s13 = sphi %s613_s13, %s659_s13   ;;  %s574_s12 = sphi %s611_s12, %s658_s12  }
   0x3   : > { %p27_p1 = scmp.ge.s32.totalorder %s25_s15, 2  ;;  %p169_p2 = scmp.lt.s32.totalorder %s582_s14, 3 }
   0x5   : > { %s661_s15 = smov (%p27_p1, %s25_s15), 0  ;;  %p170_p3 = pnand %p486_p0, %p169_p2 }
   0x6   : > { %p203_p4 = scmp.lt.s32.totalorder (!%p170_p3), %s574_s12, 1  ;;  %s584_s20 = smov (!%p170_p3), 127   ;;  %v586_v9 = vmov (!%p170_p3), 0.0|0.0   ;;  %vm587_vm0 = vmmov (!%p170_p3), 0   ;;  %v588_v11 = vmov (!%p170_p3), 0.0   ;;  %v590_v12 = vmov (!%p170_p3), 0  }
   0x7   : > { %173 = sbr.rel (%p170_p3) target bundleno = 376 (0x178), region = 32  ;;  %s585_s21 = smov (!%p170_p3), 119   ;;  %519 = vmatprep.subr.bf16.mxu0 (!%p170_p3), %v586_v9  ;;  %516 = vmatprep.mubr.msk.f32.mxu0 (!%p170_p3), %vm587_vm0, %v588_v11  ;;  %v293_v13 = vld [vmem:[%s656_s2] sm:$0xf] (!%p170_p3)  ;;  %vm235_vm1 = vcmask (!%p170_p3), 1039360   ;;  %vm262_vm2 = vcmask (!%p170_p3), 973824  }
   0x8   : > { %s589_s22 = smov (!%p170_p3), 118   ;;  %556 = vset.pattern.permute.xlu0 (!%p170_p3), %v590_v12  ;;  %vm283_vm3 = vcmask (!%p170_p3), 965632   ;;  %vm303_vm4 = vcmask (!%p170_p3), 1043456   ;;  %v287_v36 = vld [vmem:[%s655_s1] sm:$0xf] (!%p170_p3)  ;;  %vm299_vm5 = vcmask (!%p170_p3), 293888  }
   0xe   : > { %s663_s12 = smov (!%p203_p4, %s574_s12), 1 }
   0xf   : > { %s499_s16 = sshll.u32 %s663_s12, 5  ;;  %s489_s27 = sshll.u32 %s663_s12, 2 }
  0x10   : > { %s207_s19 = scalar_lea.vmem %s654_s0, %s499_s16  ;;  %s222_s30 = scalar_lea.vmem %s657_s3, %s489_s27 }
  0x11   : > { %v493_v0 = vld [vmem:[%s207_s19 + $0x10] sm:$0xff]  ;;  %v228_v1 = vld [vmem:[%s207_s19] sm:$0xff]  ;;  %v490_v4 = vld [vmem:[%s207_s19 + $0x8] sm:$0xf] }
  0x12   : > { %248 = vrot.lane.b32.xlu1 %v493_v0, %s584_s20  ;;  %v247_v2 = vcombine.high %v493_v0, %v493_v0  ;;  %231 = vrot.lane.b32.xlu0 %v228_v1, %s584_s20  ;;  %v223_v3 = vld [vmem:[%s207_s19] sm:$0xf]  ;;  %227 = vst [vmem:[#allocation2 + $0x4] sm:$0xf] %v490_v4  ;;  %v491_v5 = vld [vmem:[%s207_s19 + $0x10] sm:$0xf]  ;;  %v230_v7 = vcombine.high %v228_v1, %v228_v1 }
  0x13   : > { %224 = vst [vmem:[#allocation2] sm:$0xf] %v223_v3  ;;  %v492_v6 = vld [vmem:[%s207_s19 + $0x18] sm:$0xf]  ;;  %241 = vst [vmem:[#allocation2 + $0xc] sm:$0xf] %v491_v5 }
  0x14   : > { %244 = vst [vmem:[#allocation2 + $0x10] sm:$0xf] %v492_v6  ;;  %v494_v8 = vld [vmem:[%s207_s19 + $0x8] sm:$0xff] }
  0x15   : > { %v268_v10 = vcombine.high %v494_v8, %v494_v8 }
  0x16   : > { %250 = vrot.lane.b32.xlu1 %v247_v2, %s584_s20  ;;  %258 = vrot.lane.b32.xlu0 %v228_v1, %s585_s21 }
  0x1a   : > { %260 = vrot.lane.b32.xlu1 %v230_v7, %s585_s21  ;;  %233 = vrot.lane.b32.xlu0 %v230_v7, %s584_s20  ;;  %v288_v26 = vld [vmem:[#allocation2] sm:$0xff] }
  0x1e   : > { %271 = vrot.lane.b32.xlu1 %v268_v10, %s585_s21  ;;  %269 = vrot.lane.b32.xlu0 %v494_v8, %s585_s21 }
  0x22   : > { %281 = vrot.lane.b32.xlu1 %v230_v7, %s589_s22  ;;  %279 = vrot.lane.b32.xlu0 %v228_v1, %s589_s22 }
  0x26   : > { %296 = vperm.xlu0 %556, %v293_v13  }
  0x84   : > { %v249_v14 = vpop.permute.xlu1 %248  ;;  %v232_v15 = vpop.permute.xlu0 %231 }
  0x88   : > { %v251_v16 = vpop.permute.xlu1 %250  ;;  %v259_v17 = vpop.permute.xlu0 %258 }
  0x89   : > { %v252_v18 = vsel %vm235_vm1, %v249_v14, %v251_v16 }
  0x8a   : > { %254 = vst [vmem:[#allocation2 + $0x14] sm:$0xf] %v252_v18 }
  0x8c   : > { %v261_v19 = vpop.permute.xlu1 %260  ;;  %v234_v20 = vpop.permute.xlu0 %233 }
  0x8d   : > { %v263_v21 = vsel %vm262_vm2, %v259_v17, %v261_v19  ;;  %v236_v22 = vsel %vm235_vm1, %v232_v15, %v234_v20 }
  0x8e   : > { %265 = vst [vmem:[#allocation2 + $0x18] sm:$0xf] %v263_v21  ;;  %238 = vst [vmem:[#allocation2 + $0x8] sm:$0xf] %v236_v22 }
  0x90   : > { %v272_v23 = vpop.permute.xlu1 %271  ;;  %v270_v24 = vpop.permute.xlu0 %269 }
  0x91   : > { %v273_v25 = vsel %vm262_vm2, %v270_v24, %v272_v23  ;;  %v290_v32 = vld [vmem:[#allocation2 + $0x10] sm:$0xff] }
  0x92   : > { %275 = vst [vmem:[#allocation2 + $0x1c] sm:$0xf] %v273_v25 }
  0x94   : > { %v282_v27 = vpop.permute.xlu1 %281  ;;  %v280_v28 = vpop.permute.xlu0 %279 }
  0x95   : > { %v284_v29 = vsel %vm283_vm3, %v280_v28, %v282_v27  ;;  %v289_v30 = vld [vmem:[#allocation2 + $0x8] sm:$0xff] }
  0x96   : > { %286 = vst [vmem:[#allocation2 + $0x20] sm:$0xf] %v284_v29  ;;  %v520_v31 = vpack.c.bf16 %v289_v30, %v288_v26 }
  0x98   : > { %521 = vmatpush3.bf16.msra.mxu0 %v520_v31 }
  0x99   : > { %522 = vmatprep.subr.bf16.mxu0 %v586_v9  ;;  %v291_v33 = vld [vmem:[#allocation2 + $0x18] sm:$0xff] }
  0x9a   : > { %v523_v34 = vpack.c.bf16 %v291_v33, %v290_v32 }
  0x9c   : > { %524 = vmatpush3.bf16.msra.mxu0 %v523_v34 }
  0x9d   : > { %514 = vmatprep.subr.mxu0 %v588_v11  ;;  %v292_v35 = vld [vmem:[#allocation2 + $0x20] sm:$0xf] }
  0xa0   : > { %515 = vmatpush3.msk.msra.mxu0 %vm303_vm4, %v292_v35 }
  0xa1   : > { %517 = vmatmul.mubr.msk.f32.vlgmr.msra.gmra.mrb[0].mxu0 %vm299_vm5, %v287_v36 }
  0xa5   : > { %v297_v37 = vpop.permute.xlu0 %296 }
 0x174   : > { %v373_v38 = vpop.f32.mrb[0].mxu0 }
 0x175   : > { %v374_v39 = vadd.f32 %v373_v38, %v297_v37  ;;  %v518_v40 = vpop.f32.mrb[1].mxu0 }
 0x177   : > { %377 = vst [vmem:[%s222_s30] sm:$0xf] %v374_v39 }
 0x178 PF: > { %s13_s14 = sadd.s32 1, %s582_s14   ;;  %s658_s12 = smov %s578_s13 }
 0x179   : > { %p10_p5 = scmp.ge.s32.totalorder %s13_s14, 4   ;;  %s659_s13 = smov %s661_s15 }
 0x17b   :  { %12 = sbr.rel (!%p10_p5) target bundleno = 2 (0x2), region = 71 }

</bundles_post_ra>
